<compile_context>
chip_gen: v7x
topology: tpu7x:2x2x1
jax: 0.10.0
libtpu: 0.0.40
codegen_flags: <defaults>
</compile_context>

<pallas_src>
import functools
import math

import jax
import jax.numpy as jnp
from jax import lax
from jax.experimental import pallas as pl
from jax.experimental.pallas import tpu as pltpu


_VMEM_LIMIT_BYTES = 48 * 1024 * 1024   # explicit scoped-VMEM ceiling (safe on v5e/v6e/v7x)
_VMEM_TILE_BUDGET = 24 * 1024 * 1024   # per-tile working-set target used to pick tile_h


# ---------------------------------------------------------------------------
# Fused Block kernels
# ---------------------------------------------------------------------------
def _block_s1_kernel(x_ref, w1sc_ref, b1_ref, w2_ref, b2_ref, w3_ref, b3_ref,
                     o_ref, hpad_ref, *, H, W, TH, Cin, P, Cout, has_conv_sc):
    """Stride-1 path, H-tiled.  Per (image, row-tile):
    expand(+shortcut) 1x1 -> +b1,ReLU -> depthwise 3x3 (pad 1) -> +b2,ReLU ->
    project 1x1 -> +merged bias -> + shortcut."""
    t = pl.program_id(1)
    n_tiles = pl.num_programs(1)
    r0 = t * TH

    # ---- gather TH+2 input rows (1-row halo each side; clamped at image edge)
    top = x_ref[pl.ds(jnp.maximum(r0 - 1, 0), 1), :, :]
    core = x_ref[pl.ds(r0, TH), :, :]
    bot = x_ref[pl.ds(jnp.minimum(r0 + TH, H - 1), 1), :, :]
    xs = jnp.concatenate([top, core, bot], axis=0)            # (TH+2, W, Cin)

    # ---- merged 1x1 expand (+ shortcut conv) on the MXU: bf16 operands, f32 acc
    hs = jnp.dot(xs.reshape((TH + 2) * W, Cin).astype(jnp.bfloat16),
                 w1sc_ref[...], preferred_element_type=jnp.float32)
    h_lin = hs[:, :P] if has_conv_sc else hs
    h = jnp.maximum(h_lin + b1_ref[...], 0.0).reshape(TH + 2, W, P)

    # zero halo rows that fall outside the image (they are conv2's zero padding)
    row = lax.broadcasted_iota(jnp.int32, (TH + 2, 1, 1), 0)
    valid = ((row > 0) | (t > 0)) & ((row < TH + 1) | (t < n_tiles - 1))
    h = jnp.where(valid, h, 0.0)

    # ---- depthwise 3x3 from a column-padded VMEM scratch (BN2 scale in w2)
    zcol = jnp.zeros((TH + 2, 1, P), jnp.float32)
    hpad_ref[:, pl.ds(0, 1), :] = zcol                    # left zero pad
    hpad_ref[:, pl.ds(W + 1, 1), :] = zcol                # right zero pad
    hpad_ref[:, pl.ds(1, W), :] = h                       # interior

    w2 = w2_ref[...]                                      # (9, P)
    # pre-shifted column views: 2 misaligned sublane reads instead of 6
    cols = [hpad_ref[:, pl.ds(dj, W), :] for dj in range(3)]
    d = None
    for di in range(3):
        for dj in range(3):
            term = cols[dj][di:di + TH] * w2[3 * di + dj]
            d = term if d is None else d + term
    d = jnp.maximum(d + b2_ref[...].reshape(1, 1, P), 0.0)

    # ---- 1x1 project + merged bias (+ shortcut)
    y = jnp.dot(d.reshape(TH * W, P).astype(jnp.bfloat16), w3_ref[...],
                preferred_element_type=jnp.float32) + b3_ref[...]
    if has_conv_sc:
        sc = hs[:, P:].reshape(TH + 2, W, Cout)[1:TH + 1].reshape(TH * W, Cout)
        y = y + sc
    else:
        y = y + core.reshape(TH * W, Cin)        # identity shortcut (Cin == Cout)

    o_ref[...] = y.reshape(TH, W, Cout).astype(o_ref.dtype)


def _block_s2_kernel(xq_ref, w1_ref, b1_ref, w2_ref, b2_ref, w3_ref, b3_ref,
                     o_ref, ee_ref, eo_ref, oe_ref, oo_ref,
                     *, Ho, Wo, Cin, P, Cout):
    """Stride-2 path (no residual).  The padded expanded activation is stored
    phase-decomposed by (row, col) parity of the *padded* index so every 3x3
    tap is a contiguous slice (no strided loads)."""
    # one merged expand matmul over the 4 stacked parity quarters (M = H*W)
    xq = xq_ref[...].reshape(4 * Ho * Wo, Cin)
    h = jnp.dot(xq.astype(jnp.bfloat16), w1_ref[...],
                preferred_element_type=jnp.float32)
    h = jnp.maximum(h + b1_ref[...], 0.0).reshape(4, Ho, Wo, P)

    # zero only the padding borders that are actually read (megacore-safe)
    ee_ref[pl.ds(0, 1), :, :] = jnp.zeros((1, Wo + 1, P), jnp.float32)
    ee_ref[:, pl.ds(0, 1), :] = jnp.zeros((Ho + 1, 1, P), jnp.float32)
    eo_ref[pl.ds(0, 1), :, :] = jnp.zeros((1, Wo, P), jnp.float32)
    oe_ref[:, pl.ds(0, 1), :] = jnp.zeros((Ho, 1, P), jnp.float32)

    # scatter phases; padded index = original + 1, so original (odd,odd) -> (even,even)
    ee_ref[pl.ds(1, Ho), pl.ds(1, Wo), :] = h[3]   # x[1::2, 1::2]
    eo_ref[pl.ds(1, Ho), pl.ds(0, Wo), :] = h[2]   # x[1::2, 0::2]
    oe_ref[pl.ds(0, Ho), pl.ds(1, Wo), :] = h[1]   # x[0::2, 1::2]
    oo_ref[pl.ds(0, Ho), pl.ds(0, Wo), :] = h[0]   # x[0::2, 0::2]

    # depthwise 3x3, stride 2; column views pre-shifted (2 misaligned reads)
    sel = {0: (0, 0), 1: (1, 0), 2: (0, 1)}        # tap -> (parity, offset)
    colv = {
        (0, 0): ee_ref[:, pl.ds(0, Wo), :], (0, 1): eo_ref[...],
        (0, 2): ee_ref[:, pl.ds(1, Wo), :],
        (1, 0): oe_ref[:, pl.ds(0, Wo), :], (1, 1): oo_ref[...],
        (1, 2): oe_ref[:, pl.ds(1, Wo), :],
    }
    w2 = w2_ref[...]
    d = None
    for di in range(3):
        rp, ro = sel[di]
        for dj in range(3):
            term = colv[(rp, dj)][ro:ro + Ho] * w2[3 * di + dj]
            d = term if d is None else d + term
    d = jnp.maximum(d + b2_ref[...].reshape(1, 1, P), 0.0)

    y = jnp.dot(d.reshape(Ho * Wo, P).astype(jnp.bfloat16), w3_ref[...],
                preferred_element_type=jnp.float32) + b3_ref[...]
    o_ref[...] = y.reshape(Ho, Wo, Cout).astype(o_ref.dtype)


# ---------------------------------------------------------------------------
# Wrapper: BN folding, weight prep, tiling choice, pallas_call plumbing
# ---------------------------------------------------------------------------
def _fold_bn(bn, eps=1e-5):
    gamma, beta, mean, var = bn
    scale = gamma / jnp.sqrt(var + eps)
    bias = beta - mean * scale
    return (scale.reshape(1, -1).astype(jnp.float32),
            bias.reshape(1, -1).astype(jnp.float32))


def _pick_tile_h(H, W, Cin, P, Cout, budget_bytes):
    """Largest divisor of H whose per-tile f32 working set fits the budget."""
    for th in sorted((d for d in range(1, H + 1) if H % d == 0), reverse=True):
        live = ((th + 2) * (W + 2) * P              # padded VMEM scratch
                + 6 * (th + 2) * W * (P + Cout)     # h / hs / shifted cols / d
                + 2 * H * W * Cin                   # resident input block (x2 buf)
                + 2 * th * W * Cout)                # output block (x2 buf)
        if 4 * live <= budget_bytes:
            return th
    return 1


def block_forward(params, x_nchw, *, stride, tile_h=None):
    """Forward pass of the PyTorch `Block` (eval mode).  NCHW in, NCHW out.
    # TODO(synk): keep activations NHWC across chained Blocks to drop the
    # wrapper transposes; lane-dense output for small Cout."""
    x = jnp.transpose(x_nchw, (0, 2, 3, 1)).astype(jnp.float32)     # NHWC
    N, H, W, Cin = x.shape
    P = params["conv1_w"].shape[0]
    Cout = params["conv3_w"].shape[0]

    # Fold BN scales into the conv weights once (outside the kernel); only
    # per-channel biases remain in-kernel.  MXU weight operands cast to bf16.
    s1, b1 = _fold_bn(params["bn1"])
    s2, b2 = _fold_bn(params["bn2"])
    s3, b3 = _fold_bn(params["bn3"])
    w1 = params["conv1_w"].reshape(P, Cin).T * s1                       # [Cin, P]
    w2 = (params["conv2_w"].reshape(P, 9).T * s2).astype(jnp.float32)   # [9,  P]
    w3 = (params["conv3_w"].reshape(Cout, P).T * s3).astype(jnp.bfloat16)

    if stride == 1:
        has_conv_sc = "sc_w" in params
        if has_conv_sc:                               # 1x1 conv + BN shortcut
            ssc, bsc = _fold_bn(params["bn_sc"])
            wsc = params["sc_w"].reshape(Cout, Cin).T * ssc             # [Cin, Cout]
            w1sc = jnp.concatenate([w1, wsc], axis=1).astype(jnp.bfloat16)
            b_out = b3 + bsc                          # merged bn3 + bn_sc bias
        else:                                         # identity shortcut
            assert Cin == Cout, "identity shortcut requires in_planes == out_planes"
            w1sc = w1.astype(jnp.bfloat16)
            b_out = b3

        if tile_h is None:
            tile_h = _pick_tile_h(H, W, Cin, P, Cout, _VMEM_TILE_BUDGET)
        assert H % tile_h == 0, "tile_h must divide H"
        n_tiles = H // tile_h
        wcols = P + Cout if has_conv_sc else P

        kernel = functools.partial(_block_s1_kernel, H=H, W=W, TH=tile_h,
                                   Cin=Cin, P=P, Cout=Cout,
                                   has_conv_sc=has_conv_sc)
        full2 = lambda shape: pl.BlockSpec(shape, lambda n, t: (0, 0))
        out = pl.pallas_call(
            kernel,
            out_shape=jax.ShapeDtypeStruct((N, H, W, Cout), jnp.float32),
            grid=(N, n_tiles),
            in_specs=[
                pl.BlockSpec((None, H, W, Cin), lambda n, t: (n, 0, 0, 0)),
                full2((Cin, wcols)), full2((1, P)),
                full2((9, P)), full2((1, P)),
                full2((P, Cout)), full2((1, Cout)),
            ],
            out_specs=pl.BlockSpec((None, tile_h, W, Cout),
                                   lambda n, t: (n, t, 0, 0)),
            scratch_shapes=[pltpu.VMEM((tile_h + 2, W + 2, P), jnp.float32)],
            compiler_params=pltpu.CompilerParams(
                dimension_semantics=("parallel", "parallel"),
                vmem_limit_bytes=_VMEM_LIMIT_BYTES),
        )(x, w1sc, b1, w2, b2, w3, b_out)
    else:
        assert H % 2 == 0 and W % 2 == 0, "stride-2 path assumes even H, W"
        Ho, Wo = H // 2, W // 2
        # TODO(synk): fold the parity split into the BlockSpec / H-tile the
        # stride-2 kernel instead of materializing the stacked quarters.
        xq = jnp.stack([x[:, 0::2, 0::2, :], x[:, 0::2, 1::2, :],
                        x[:, 1::2, 0::2, :], x[:, 1::2, 1::2, :]],
                       axis=1).reshape(N * 4, Ho, Wo, Cin)
        w1b = w1.astype(jnp.bfloat16)

        kernel = functools.partial(_block_s2_kernel, Ho=Ho, Wo=Wo,
                                   Cin=Cin, P=P, Cout=Cout)
        full2 = lambda shape: pl.BlockSpec(shape, lambda n: (0, 0))
        out = pl.pallas_call(
            kernel,
            out_shape=jax.ShapeDtypeStruct((N, Ho, Wo, Cout), jnp.float32),
            grid=(N,),
            in_specs=[
                pl.BlockSpec((4, Ho, Wo, Cin), lambda n: (n, 0, 0, 0)),
                full2((Cin, P)), full2((1, P)),
                full2((9, P)), full2((1, P)),
                full2((P, Cout)), full2((1, Cout)),
            ],
            out_specs=pl.BlockSpec((None, Ho, Wo, Cout),
                                   lambda n: (n, 0, 0, 0)),
            scratch_shapes=[pltpu.VMEM((Ho + 1, Wo + 1, P), jnp.float32),
                            pltpu.VMEM((Ho + 1, Wo, P), jnp.float32),
                            pltpu.VMEM((Ho, Wo + 1, P), jnp.float32),
                            pltpu.VMEM((Ho, Wo, P), jnp.float32)],
            compiler_params=pltpu.CompilerParams(
                dimension_semantics=("parallel",),
                vmem_limit_bytes=_VMEM_LIMIT_BYTES),
        )(xq, w1b, b1, w2, b2, w3, b3)

    return jnp.transpose(out, (0, 3, 1, 2))            # back to NCHW


# ---------------------------------------------------------------------------
# Pure-JAX reference (for correctness check)
# ---------------------------------------------------------------------------
def block_reference(params, x_nchw, *, stride):
    def bn(y, p, eps=1e-5):
        gamma, beta, mean, var = p
        return (y - mean) / jnp.sqrt(var + eps) * gamma + beta

    def conv(x, w, s, pad, groups=1):
        return jax.lax.conv_general_dilated(
            x, jnp.transpose(w, (2, 3, 1, 0)),
            window_strides=(s, s), padding=[(pad, pad), (pad, pad)],
            dimension_numbers=("NHWC", "HWIO", "NHWC"),
            feature_group_count=groups,
            precision=jax.lax.Precision.HIGHEST)

    x = jnp.transpose(x_nchw, (0, 2, 3, 1)).astype(jnp.float32)
    P = params["conv1_w"].shape[0]
    out = jax.nn.relu(bn(conv(x, params["conv1_w"], 1, 0), params["bn1"]))
    out = jax.nn.relu(bn(conv(out, params["conv2_w"], stride, 1, groups=P),
                         params["bn2"]))
    out = bn(conv(out, params["conv3_w"], 1, 0), params["bn3"])
    if stride == 1:
        sc = x
        if "sc_w" in params:
            sc = bn(conv(x, params["sc_w"], 1, 0), params["bn_sc"])
        out = out + sc
    return jnp.transpose(out, (0, 3, 1, 2))


# ---------------------------------------------------------------------------
# Deterministic parameter init (shapes follow the PyTorch __init__)
# ---------------------------------------------------------------------------
def init_block_params(key, in_planes, out_planes, expansion, stride):
    planes = expansion * in_planes
    ks = jax.random.split(key, 8)

    def conv_w(k, cout, cin, kh, kw):
        fan_in = cin * kh * kw
        bound = 1.0 / math.sqrt(fan_in)
        return jax.random.uniform(k, (cout, cin, kh, kw), jnp.float32, -bound, bound)

    def bn_p(k, c):
        k1, k2, k3, k4 = jax.random.split(k, 4)
        gamma = 1.0 + 0.1 * jax.random.normal(k1, (c,), jnp.float32)
        beta = 0.1 * jax.random.normal(k2, (c,), jnp.float32)
        mean = 0.1 * jax.random.normal(k3, (c,), jnp.float32)
        var = 1.0 + 0.1 * jax.random.uniform(k4, (c,), jnp.float32)
        return (gamma, beta, mean, var)

    params = {
        "conv1_w": conv_w(ks[0], planes, in_planes, 1, 1),
        "bn1": bn_p(ks[1], planes),
        "conv2_w": conv_w(ks[2], planes, 1, 3, 3),      # depthwise: groups=planes
        "bn2": bn_p(ks[3], planes),
        "conv3_w": conv_w(ks[4], out_planes, planes, 1, 1),
        "bn3": bn_p(ks[5], out_planes),
    }
    if stride == 1 and in_planes != out_planes:
        params["sc_w"] = conv_w(ks[6], out_planes, in_planes, 1, 1)
        params["bn_sc"] = bn_p(ks[7], out_planes)
    return params


if __name__ == "__main__":
    key = jax.random.PRNGKey(0)
    kp1, kp2, kp3, kx1, kx2 = jax.random.split(key, 5)

    fwd = jax.jit(block_forward, static_argnames=("stride", "tile_h"))

    def check(params, x, stride, tile_h=None, tol=8e-2):
        out = fwd(params, x, stride=stride, tile_h=tile_h)
        jax.block_until_ready(out)
        ref = block_reference(params, x, stride=stride)
        assert out.shape == ref.shape and out.dtype == jnp.float32
        err = float(jnp.max(jnp.abs(out - ref)))
        assert err < tol, f"stride={stride} tile_h={tile_h} err={err}"
        return err

    N, Cin, H, W, expansion, Cout = 2, 4, 16, 16, 6, 8
    x = jax.random.normal(kx1, (N, Cin, H, W), jnp.float32)     # NCHW like PyTorch

    # stride-1, conv+BN projection shortcut: H-tiled (halo rows exercised) + auto tile
    p1 = init_block_params(kp1, Cin, Cout, expansion, stride=1)
    check(p1, x, stride=1, tile_h=4)
    check(p1, x, stride=1)

    # stride-1, identity shortcut (in_planes == out_planes)
    xi = jax.random.normal(kx2, (N, Cout, H, W), jnp.float32)
    p3 = init_block_params(kp3, Cout, Cout, expansion, stride=1)
    check(p3, xi, stride=1, tile_h=8)

    # stride-2 (downsampling, no residual)
    p2 = init_block_params(kp2, Cin, Cout, expansion, stride=2)
    check(p2, x, stride=2)

    print("KERNEL_OK")
</pallas_src>

<mosaic_0001>
module attributes {stable_mosaic.version = 11 : i64} {
  func.func @_block_s1_kernel(%arg0: i32, %arg1: i32, %arg2: memref<1x16x16x4xf32, #tpu.memory_space<vmem>>, %arg3: memref<4x32xbf16, #tpu.memory_space<vmem>>, %arg4: memref<1x24xf32, #tpu.memory_space<vmem>>, %arg5: memref<9x24xf32, #tpu.memory_space<vmem>>, %arg6: memref<1x24xf32, #tpu.memory_space<vmem>>, %arg7: memref<24x8xbf16, #tpu.memory_space<vmem>>, %arg8: memref<1x8xf32, #tpu.memory_space<vmem>>, %arg9: memref<1x4x16x8xf32, #tpu.memory_space<vmem>>, %arg10: memref<6x18x24xf32, #tpu.memory_space<vmem>>) attributes {dimension_semantics = [#tpu.dimension_semantics<parallel>, #tpu.dimension_semantics<parallel>], iteration_bounds = array<i64: 2, 4>, scalar_prefetch = 0 : i64, scratch_operands = 1 : i64, tpu.core_type = #tpu.core_type<tc>, window_params = [{transform_indices = @transform_0, window_bounds = array<i64: 1, 16, 16, 4>}, {pipeline_mode = #tpu.pipeline_mode<synchronous>, transform_indices = @transform_1, window_bounds = array<i64: 4, 32>}, {pipeline_mode = #tpu.pipeline_mode<synchronous>, transform_indices = @transform_2, window_bounds = array<i64: 1, 24>}, {pipeline_mode = #tpu.pipeline_mode<synchronous>, transform_indices = @transform_3, window_bounds = array<i64: 9, 24>}, {pipeline_mode = #tpu.pipeline_mode<synchronous>, transform_indices = @transform_4, window_bounds = array<i64: 1, 24>}, {pipeline_mode = #tpu.pipeline_mode<synchronous>, transform_indices = @transform_5, window_bounds = array<i64: 24, 8>}, {pipeline_mode = #tpu.pipeline_mode<synchronous>, transform_indices = @transform_6, window_bounds = array<i64: 1, 8>}, {transform_indices = @transform_7, window_bounds = array<i64: 1, 4, 16, 8>}]} {
    %c4_i32 = arith.constant 4 : i32
    %0 = arith.muli %arg1, %c4_i32 : i32
    %c1_i32 = arith.constant 1 : i32
    %1 = arith.subi %0, %c1_i32 : i32
    %c0_i32 = arith.constant 0 : i32
    %2 = arith.maxsi %1, %c0_i32 : i32
    %c0 = arith.constant 0 : index
    %3 = arith.index_cast %2 : i32 to index
    %c0_0 = arith.constant 0 : index
    %c0_1 = arith.constant 0 : index
    %4 = vector.load %arg2[%c0, %3, %c0_0, %c0_1] : memref<1x16x16x4xf32, #tpu.memory_space<vmem>>, vector<1x1x16x4xf32>
    %5 = vector.shape_cast %4 : vector<1x1x16x4xf32> to vector<1x16x4xf32>
    %c0_2 = arith.constant 0 : index
    %6 = arith.index_cast %0 : i32 to index
    %c0_3 = arith.constant 0 : index
    %c0_4 = arith.constant 0 : index
    %7 = vector.load %arg2[%c0_2, %6, %c0_3, %c0_4] : memref<1x16x16x4xf32, #tpu.memory_space<vmem>>, vector<1x4x16x4xf32>
    %8 = vector.shape_cast %7 : vector<1x4x16x4xf32> to vector<4x16x4xf32>
    %c4_i32_5 = arith.constant 4 : i32
    %9 = arith.addi %0, %c4_i32_5 : i32
    %c15_i32 = arith.constant 15 : i32
    %10 = arith.minsi %9, %c15_i32 : i32
    %c0_6 = arith.constant 0 : index
    %11 = arith.index_cast %10 : i32 to index
    %c0_7 = arith.constant 0 : index
    %c0_8 = arith.constant 0 : index
    %12 = vector.load %arg2[%c0_6, %11, %c0_7, %c0_8] : memref<1x16x16x4xf32, #tpu.memory_space<vmem>>, vector<1x1x16x4xf32>
    %13 = vector.shape_cast %12 : vector<1x1x16x4xf32> to vector<1x16x4xf32>
    %14 = tpu.concatenate %5, %8, %13 in 0 : vector<1x16x4xf32>, vector<4x16x4xf32>, vector<1x16x4xf32> -> vector<6x16x4xf32>
    %15 = vector.shape_cast %14 : vector<6x16x4xf32> to vector<96x4xf32>
    %16 = arith.truncf %15 : vector<96x4xf32> to vector<96x4xbf16>
    %c0_9 = arith.constant 0 : index
    %c0_10 = arith.constant 0 : index
    %17 = vector.load %arg3[%c0_9, %c0_10] : memref<4x32xbf16, #tpu.memory_space<vmem>>, vector<4x32xbf16>
    %cst = arith.constant dense<0.000000e+00> : vector<96x32xf32>
    %18 = tpu.matmul %16, %17, %cst {dimension_numbers = #tpu.dot_dimension_numbers<[1], [0], [0], [1], [0, 0, 1, 1], [], []>} : vector<96x4xbf16>, vector<4x32xbf16>, vector<96x32xf32> -> vector<96x32xf32>
    %19 = vector.extract_strided_slice %18 {offsets = [0, 0], sizes = [96, 24], strides = [1, 1]} : vector<96x32xf32> to vector<96x24xf32>
    %c0_11 = arith.constant 0 : index
    %c0_12 = arith.constant 0 : index
    %20 = vector.load %arg4[%c0_11, %c0_12] : memref<1x24xf32, #tpu.memory_space<vmem>>, vector<1x24xf32>
    %21 = vector.broadcast %20 : vector<1x24xf32> to vector<96x24xf32>
    %22 = arith.addf %19, %21 : vector<96x24xf32>
    %cst_13 = arith.constant 0.000000e+00 : f32
    %23 = vector.broadcast %cst_13 : f32 to vector<96x24xf32>
    %24 = arith.maximumf %22, %23 : vector<96x24xf32>
    %25 = vector.shape_cast %24 : vector<96x24xf32> to vector<6x16x24xf32>
    %26 = tpu.iota {dimensions = array<i32: 0>} : vector<6x1x1xi32>
    %c0_i32_14 = arith.constant 0 : i32
    %27 = vector.broadcast %c0_i32_14 : i32 to vector<6x1x1xi32>
    %28 = arith.cmpi sgt, %26, %27 : vector<6x1x1xi32>
    %c0_i32_15 = arith.constant 0 : i32
    %29 = arith.cmpi sgt, %arg1, %c0_i32_15 : i32
    %30 = vector.broadcast %29 : i1 to vector<6x1x1xi1>
    %31 = arith.ori %28, %30 : vector<6x1x1xi1>
    %c5_i32 = arith.constant 5 : i32
    %32 = vector.broadcast %c5_i32 : i32 to vector<6x1x1xi32>
    %33 = arith.cmpi slt, %26, %32 : vector<6x1x1xi32>
    %c3_i32 = arith.constant 3 : i32
    %34 = arith.cmpi slt, %arg1, %c3_i32 : i32
    %35 = vector.broadcast %34 : i1 to vector<6x1x1xi1>
    %36 = arith.ori %33, %35 : vector<6x1x1xi1>
    %37 = arith.andi %31, %36 : vector<6x1x1xi1>
    %cst_16 = arith.constant 0.000000e+00 : f32
    %38 = vector.shape_cast %37 : vector<6x1x1xi1> to vector<6x1x1xi1>
    %39 = vector.broadcast %38 : vector<6x1x1xi1> to vector<6x16x24xi1>
    %40 = vector.broadcast %cst_16 : f32 to vector<6x16x24xf32>
    %41 = arith.select %39, %25, %40 : vector<6x16x24xi1>, vector<6x16x24xf32>
    %cst_17 = arith.constant 0.000000e+00 : f32
    %42 = vector.broadcast %cst_17 : f32 to vector<6x1x24xf32>
    %c0_18 = arith.constant 0 : index
    %c0_19 = arith.constant 0 : index
    %c0_20 = arith.constant 0 : index
    %43 = vector.load %arg10[%c0_18, %c0_19, %c0_20] : memref<6x18x24xf32, #tpu.memory_space<vmem>>, vector<6x1x24xf32>
    tpu.vector_store %arg10[%c0_18, %c0_19, %c0_20], %42 {strides = array<i32>} : memref<6x18x24xf32, #tpu.memory_space<vmem>>, vector<6x1x24xf32>,
    %c0_21 = arith.constant 0 : index
    %c17 = arith.constant 17 : index
    %c0_22 = arith.constant 0 : index
    %44 = vector.load %arg10[%c0_21, %c17, %c0_22] : memref<6x18x24xf32, #tpu.memory_space<vmem>>, vector<6x1x24xf32>
    tpu.vector_store %arg10[%c0_21, %c17, %c0_22], %42 {strides = array<i32>} : memref<6x18x24xf32, #tpu.memory_space<vmem>>, vector<6x1x24xf32>,
    %c0_23 = arith.constant 0 : index
    %c1 = arith.constant 1 : index
    %c0_24 = arith.constant 0 : index
    %45 = vector.load %arg10[%c0_23, %c1, %c0_24] : memref<6x18x24xf32, #tpu.memory_space<vmem>>, vector<6x16x24xf32>
    tpu.vector_store %arg10[%c0_23, %c1, %c0_24], %41 {strides = array<i32>} : memref<6x18x24xf32, #tpu.memory_space<vmem>>, vector<6x16x24xf32>,
    %c0_25 = arith.constant 0 : index
    %c0_26 = arith.constant 0 : index
    %46 = vector.load %arg5[%c0_25, %c0_26] : memref<9x24xf32, #tpu.memory_space<vmem>>, vector<9x24xf32>
    %c0_27 = arith.constant 0 : index
    %c0_28 = arith.constant 0 : index
    %c0_29 = arith.constant 0 : index
    %47 = vector.load %arg10[%c0_27, %c0_28, %c0_29] : memref<6x18x24xf32, #tpu.memory_space<vmem>>, vector<6x16x24xf32>
    %c0_30 = arith.constant 0 : index
    %c1_31 = arith.constant 1 : index
    %c0_32 = arith.constant 0 : index
    %48 = vector.load %arg10[%c0_30, %c1_31, %c0_32] : memref<6x18x24xf32, #tpu.memory_space<vmem>>, vector<6x16x24xf32>
    %c0_33 = arith.constant 0 : index
    %c2 = arith.constant 2 : index
    %c0_34 = arith.constant 0 : index
    %49 = vector.load %arg10[%c0_33, %c2, %c0_34] : memref<6x18x24xf32, #tpu.memory_space<vmem>>, vector<6x16x24xf32>
    %50 = vector.extract_strided_slice %47 {offsets = [0, 0, 0], sizes = [4, 16, 24], strides = [1, 1, 1]} : vector<6x16x24xf32> to vector<4x16x24xf32>
    %51 = vector.extract_strided_slice %46 {offsets = [0, 0], sizes = [1, 24], strides = [1, 1]} : vector<9x24xf32> to vector<1x24xf32>
    %52 = vector.shape_cast %51 : vector<1x24xf32> to vector<24xf32>
    %53 = vector.shape_cast %52 : vector<24xf32> to vector<1x1x24xf32>
    %54 = vector.broadcast %53 : vector<1x1x24xf32> to vector<4x16x24xf32>
    %55 = arith.mulf %50, %54 : vector<4x16x24xf32>
    %56 = vector.extract_strided_slice %48 {offsets = [0, 0, 0], sizes = [4, 16, 24], strides = [1, 1, 1]} : vector<6x16x24xf32> to vector<4x16x24xf32>
    %57 = vector.extract_strided_slice %46 {offsets = [1, 0], sizes = [1, 24], strides = [1, 1]} : vector<9x24xf32> to vector<1x24xf32>
    %58 = vector.shape_cast %57 : vector<1x24xf32> to vector<24xf32>
    %59 = vector.shape_cast %58 : vector<24xf32> to vector<1x1x24xf32>
    %60 = vector.broadcast %59 : vector<1x1x24xf32> to vector<4x16x24xf32>
    %61 = arith.mulf %56, %60 : vector<4x16x24xf32>
    %62 = arith.addf %55, %61 : vector<4x16x24xf32>
    %63 = vector.extract_strided_slice %49 {offsets = [0, 0, 0], sizes = [4, 16, 24], strides = [1, 1, 1]} : vector<6x16x24xf32> to vector<4x16x24xf32>
    %64 = vector.extract_strided_slice %46 {offsets = [2, 0], sizes = [1, 24], strides = [1, 1]} : vector<9x24xf32> to vector<1x24xf32>
    %65 = vector.shape_cast %64 : vector<1x24xf32> to vector<24xf32>
    %66 = vector.shape_cast %65 : vector<24xf32> to vector<1x1x24xf32>
    %67 = vector.broadcast %66 : vector<1x1x24xf32> to vector<4x16x24xf32>
    %68 = arith.mulf %63, %67 : vector<4x16x24xf32>
    %69 = arith.addf %62, %68 : vector<4x16x24xf32>
    %70 = vector.extract_strided_slice %47 {offsets = [1, 0, 0], sizes = [4, 16, 24], strides = [1, 1, 1]} : vector<6x16x24xf32> to vector<4x16x24xf32>
    %71 = vector.extract_strided_slice %46 {offsets = [3, 0], sizes = [1, 24], strides = [1, 1]} : vector<9x24xf32> to vector<1x24xf32>
    %72 = vector.shape_cast %71 : vector<1x24xf32> to vector<24xf32>
    %73 = vector.shape_cast %72 : vector<24xf32> to vector<1x1x24xf32>
    %74 = vector.broadcast %73 : vector<1x1x24xf32> to vector<4x16x24xf32>
    %75 = arith.mulf %70, %74 : vector<4x16x24xf32>
    %76 = arith.addf %69, %75 : vector<4x16x24xf32>
    %77 = vector.extract_strided_slice %48 {offsets = [1, 0, 0], sizes = [4, 16, 24], strides = [1, 1, 1]} : vector<6x16x24xf32> to vector<4x16x24xf32>
    %78 = vector.extract_strided_slice %46 {offsets = [4, 0], sizes = [1, 24], strides = [1, 1]} : vector<9x24xf32> to vector<1x24xf32>
    %79 = vector.shape_cast %78 : vector<1x24xf32> to vector<24xf32>
    %80 = vector.shape_cast %79 : vector<24xf32> to vector<1x1x24xf32>
    %81 = vector.broadcast %80 : vector<1x1x24xf32> to vector<4x16x24xf32>
    %82 = arith.mulf %77, %81 : vector<4x16x24xf32>
    %83 = arith.addf %76, %82 : vector<4x16x24xf32>
    %84 = vector.extract_strided_slice %49 {offsets = [1, 0, 0], sizes = [4, 16, 24], strides = [1, 1, 1]} : vector<6x16x24xf32> to vector<4x16x24xf32>
    %85 = vector.extract_strided_slice %46 {offsets = [5, 0], sizes = [1, 24], strides = [1, 1]} : vector<9x24xf32> to vector<1x24xf32>
    %86 = vector.shape_cast %85 : vector<1x24xf32> to vector<24xf32>
    %87 = vector.shape_cast %86 : vector<24xf32> to vector<1x1x24xf32>
    %88 = vector.broadcast %87 : vector<1x1x24xf32> to vector<4x16x24xf32>
    %89 = arith.mulf %84, %88 : vector<4x16x24xf32>
    %90 = arith.addf %83, %89 : vector<4x16x24xf32>
    %91 = vector.extract_strided_slice %47 {offsets = [2, 0, 0], sizes = [4, 16, 24], strides = [1, 1, 1]} : vector<6x16x24xf32> to vector<4x16x24xf32>
    %92 = vector.extract_strided_slice %46 {offsets = [6, 0], sizes = [1, 24], strides = [1, 1]} : vector<9x24xf32> to vector<1x24xf32>
    %93 = vector.shape_cast %92 : vector<1x24xf32> to vector<24xf32>
    %94 = vector.shape_cast %93 : vector<24xf32> to vector<1x1x24xf32>
    %95 = vector.broadcast %94 : vector<1x1x24xf32> to vector<4x16x24xf32>
    %96 = arith.mulf %91, %95 : vector<4x16x24xf32>
    %97 = arith.addf %90, %96 : vector<4x16x24xf32>
    %98 = vector.extract_strided_slice %48 {offsets = [2, 0, 0], sizes = [4, 16, 24], strides = [1, 1, 1]} : vector<6x16x24xf32> to vector<4x16x24xf32>
    %99 = vector.extract_strided_slice %46 {offsets = [7, 0], sizes = [1, 24], strides = [1, 1]} : vector<9x24xf32> to vector<1x24xf32>
    %100 = vector.shape_cast %99 : vector<1x24xf32> to vector<24xf32>
    %101 = vector.shape_cast %100 : vector<24xf32> to vector<1x1x24xf32>
    %102 = vector.broadcast %101 : vector<1x1x24xf32> to vector<4x16x24xf32>
    %103 = arith.mulf %98, %102 : vector<4x16x24xf32>
    %104 = arith.addf %97, %103 : vector<4x16x24xf32>
    %105 = vector.extract_strided_slice %49 {offsets = [2, 0, 0], sizes = [4, 16, 24], strides = [1, 1, 1]} : vector<6x16x24xf32> to vector<4x16x24xf32>
    %106 = vector.extract_strided_slice %46 {offsets = [8, 0], sizes = [1, 24], strides = [1, 1]} : vector<9x24xf32> to vector<1x24xf32>
    %107 = vector.shape_cast %106 : vector<1x24xf32> to vector<24xf32>
    %108 = vector.shape_cast %107 : vector<24xf32> to vector<1x1x24xf32>
    %109 = vector.broadcast %108 : vector<1x1x24xf32> to vector<4x16x24xf32>
    %110 = arith.mulf %105, %109 : vector<4x16x24xf32>
    %111 = arith.addf %104, %110 : vector<4x16x24xf32>
    %c0_35 = arith.constant 0 : index
    %c0_36 = arith.constant 0 : index
    %112 = vector.load %arg6[%c0_35, %c0_36] : memref<1x24xf32, #tpu.memory_space<vmem>>, vector<1x24xf32>
    %113 = vector.shape_cast %112 : vector<1x24xf32> to vector<1x1x24xf32>
    %114 = vector.broadcast %113 : vector<1x1x24xf32> to vector<4x16x24xf32>
    %115 = arith.addf %111, %114 : vector<4x16x24xf32>
    %cst_37 = arith.constant 0.000000e+00 : f32
    %116 = vector.broadcast %cst_37 : f32 to vector<4x16x24xf32>
    %117 = arith.maximumf %115, %116 : vector<4x16x24xf32>
    %118 = vector.shape_cast %117 : vector<4x16x24xf32> to vector<64x24xf32>
    %119 = arith.truncf %118 : vector<64x24xf32> to vector<64x24xbf16>
    %c0_38 = arith.constant 0 : index
    %c0_39 = arith.constant 0 : index
    %120 = vector.load %arg7[%c0_38, %c0_39] : memref<24x8xbf16, #tpu.memory_space<vmem>>, vector<24x8xbf16>
    %cst_40 = arith.constant dense<0.000000e+00> : vector<64x8xf32>
    %121 = tpu.matmul %119, %120, %cst_40 {dimension_numbers = #tpu.dot_dimension_numbers<[1], [0], [0], [1], [0, 0, 1, 1], [], []>} : vector<64x24xbf16>, vector<24x8xbf16>, vector<64x8xf32> -> vector<64x8xf32>
    %c0_41 = arith.constant 0 : index
    %c0_42 = arith.constant 0 : index
    %122 = vector.load %arg8[%c0_41, %c0_42] : memref<1x8xf32, #tpu.memory_space<vmem>>, vector<1x8xf32>
    %123 = vector.broadcast %122 : vector<1x8xf32> to vector<64x8xf32>
    %124 = arith.addf %121, %123 : vector<64x8xf32>
    %125 = vector.extract_strided_slice %18 {offsets = [0, 24], sizes = [96, 8], strides = [1, 1]} : vector<96x32xf32> to vector<96x8xf32>
    %126 = vector.shape_cast %125 : vector<96x8xf32> to vector<6x16x8xf32>
    %127 = vector.extract_strided_slice %126 {offsets = [1, 0, 0], sizes = [4, 16, 8], strides = [1, 1, 1]} : vector<6x16x8xf32> to vector<4x16x8xf32>
    %128 = vector.shape_cast %127 : vector<4x16x8xf32> to vector<64x8xf32>
    %129 = arith.addf %124, %128 : vector<64x8xf32>
    %130 = vector.shape_cast %129 : vector<64x8xf32> to vector<4x16x8xf32>
    %c0_43 = arith.constant 0 : index
    %c0_44 = arith.constant 0 : index
    %c0_45 = arith.constant 0 : index
    %c0_46 = arith.constant 0 : index
    %131 = vector.load %arg9[%c0_43, %c0_44, %c0_45, %c0_46] : memref<1x4x16x8xf32, #tpu.memory_space<vmem>>, vector<1x4x16x8xf32>
    %132 = vector.shape_cast %131 : vector<1x4x16x8xf32> to vector<4x16x8xf32>
    %133 = vector.shape_cast %130 : vector<4x16x8xf32> to vector<1x4x16x8xf32>
    tpu.vector_store %arg9[%c0_43, %c0_44, %c0_45, %c0_46], %133 {strides = array<i32>} : memref<1x4x16x8xf32, #tpu.memory_space<vmem>>, vector<1x4x16x8xf32>,
    return
  }
  func.func @transform_0(%arg0: i32, %arg1: i32) -> (i32, i32, i32, i32) {
    %c0_i32 = arith.constant 0 : i32
    %c0_i32_0 = arith.constant 0 : i32
    %c0_i32_1 = arith.constant 0 : i32
    %c0_i32_2 = arith.constant 0 : i32
    return %arg0, %c0_i32, %c0_i32_0, %c0_i32_1 : i32, i32, i32, i32
  }
  func.func @transform_1(%arg0: i32, %arg1: i32) -> (i32, i32) {
    %c0_i32 = arith.constant 0 : i32
    %c0_i32_0 = arith.constant 0 : i32
    %c0_i32_1 = arith.constant 0 : i32
    return %c0_i32, %c0_i32_0 : i32, i32
  }
  func.func @transform_2(%arg0: i32, %arg1: i32) -> (i32, i32) {
    %c0_i32 = arith.constant 0 : i32
    %c0_i32_0 = arith.constant 0 : i32
    %c0_i32_1 = arith.constant 0 : i32
    return %c0_i32, %c0_i32_0 : i32, i32
  }
  func.func @transform_3(%arg0: i32, %arg1: i32) -> (i32, i32) {
    %c0_i32 = arith.constant 0 : i32
    %c0_i32_0 = arith.constant 0 : i32
    %c0_i32_1 = arith.constant 0 : i32
    return %c0_i32, %c0_i32_0 : i32, i32
  }
  func.func @transform_4(%arg0: i32, %arg1: i32) -> (i32, i32) {
    %c0_i32 = arith.constant 0 : i32
    %c0_i32_0 = arith.constant 0 : i32
    %c0_i32_1 = arith.constant 0 : i32
    return %c0_i32, %c0_i32_0 : i32, i32
  }
  func.func @transform_5(%arg0: i32, %arg1: i32) -> (i32, i32) {
    %c0_i32 = arith.constant 0 : i32
    %c0_i32_0 = arith.constant 0 : i32
    %c0_i32_1 = arith.constant 0 : i32
    return %c0_i32, %c0_i32_0 : i32, i32
  }
  func.func @transform_6(%arg0: i32, %arg1: i32) -> (i32, i32) {
    %c0_i32 = arith.constant 0 : i32
    %c0_i32_0 = arith.constant 0 : i32
    %c0_i32_1 = arith.constant 0 : i32
    return %c0_i32, %c0_i32_0 : i32, i32
  }
  func.func @transform_7(%arg0: i32, %arg1: i32) -> (i32, i32, i32, i32) {
    %c0_i32 = arith.constant 0 : i32
    %c0_i32_0 = arith.constant 0 : i32
    %c0_i32_1 = arith.constant 0 : i32
    return %arg0, %arg1, %c0_i32, %c0_i32_0 : i32, i32, i32, i32
  }
}

</mosaic_0001>

<bundles_post_ra>
// kernel: block_forward.1
= control target key start
LH: loop header
LB: loop body
LE: loop exit
PB: predicated region body
PF: predicated region fallthrough
CT: control target
= control target key end

     0   :  { %s1207_s24 = smov 0   ;;  %s1209_s25 = smov 0   ;;  %s1523_s0 = inlined_call_operand.vmem [shape: f32[2,16,16,4], index: 0, kind: input, shape index: {}]   ;;  %s1524_s1 = inlined_call_operand.vmem [shape: bf16[4,32], index: 1, kind: input, shape index: {}]   ;;  %s1525_s2 = inlined_call_operand.vmem [shape: f32[1,24], index: 2, kind: input, shape index: {}]   ;;  %s1526_s3 = inlined_call_operand.vmem [shape: f32[9,24], index: 3, kind: input, shape index: {}]   ;;  %s1527_s4 = inlined_call_operand.vmem [shape: f32[1,24], index: 4, kind: input, shape index: {}]   ;;  %s1528_s5 = inlined_call_operand.vmem [shape: bf16[24,8], index: 5, kind: input, shape index: {}]   ;;  %s1529_s6 = inlined_call_operand.vmem [shape: f32[1,8], index: 6, kind: input, shape index: {}]   ;;  %s1530_s7 = inlined_call_operand.vmem [shape: f32[2,16,16,8], index: 7, kind: output, shape index: {}]  }
   0x1   :  { %s1211_s26 = smov 0   ;;  %s1213_s27 = smov 0  }
   0x2   :  { %s1215_s28 = smov 0  }
   0x3 LB: > { %s26_s29 = sadd.s32 1, %s1155_s26  ;;  %s29_s30 = sadd.s32 1, %s1159_s27  ;;  %s1163_s28 = sphi %s1215_s28, %s17_s28   ;;  %s1159_s27 = sphi %s1213_s27, %s1538_s27   ;;  %s1155_s26 = sphi %s1211_s26, %s1537_s26   ;;  %s1151_s25 = sphi %s1209_s25, %s1536_s25   ;;  %s1147_s24 = sphi %s1207_s24, %s1535_s24  }
   0x4   : > { %p27_p0 = scmp.ge.s32.totalorder %s26_s29, 4  ;;  %p1008_p1 = scmp.ge.s32.totalorder %s1163_s28, 1 }
   0x5   : > { %p251_p2 = scmp.lt.s32.totalorder %s1163_s28, 9 }
   0x6   : > { %s1540_s29 = smov (%p27_p0, %s26_s29), 0  ;;  %s1542_s30 = smov (!%p27_p0, %s29_s30), %s1159_s27 }
   0x7   : > { %p252_p3 = pnand %p1008_p1, %p251_p2  ;;  %p31_p4 = scmp.ge.s32.totalorder %s1542_s30, 2 }
   0x8   : > { %v336_v0 = vld [vmem:[%s1524_s1] sm:$0x3] (!%p252_p3)  ;;  %vm356_vm0 = vcmask (!%p252_p3), 1041408   ;;  %p288_p5 = scmp.lt.s32.totalorder (!%p252_p3), %s1151_s25, 1  ;;  %s1243_s10 = sshll.u32 (!%p252_p3), %s1147_s24, 2  ;;  %vm337_vm1 = vcmask (!%p252_p3), 31744   ;;  %v560_v24 = vlaneseq (!%p252_p3) }
   0x9   : > { %s1544_s30 = smov (%p31_p4, %s1542_s30), 0  ;;  %255 = sbr.rel (%p252_p3) target bundleno = 524 (0x20c), region = 48 }
   0xa   : > { %1079 = vmatprep.subr.msk.bf16.mxu0 (!%p252_p3), %vm356_vm0, %v336_v0  ;;  %v358_v1 = vsel (!%p252_p3), %vm356_vm0, %v336_v0, 0  ;;  %p296_p6 = scmp.lt.s32.totalorder (!%p252_p3), %s1243_s10, 15  ;;  %s1016_s11 = sadd.s32 (!%p252_p3), 4294967295, %s1243_s10  ;;  %vm496_vm2 = vcmask (!%p252_p3), 188416   ;;  %v1165_v20 = vmov (!%p252_p3), 0.0   ;;  %v1123_v21 = vld [vmem:[%s1528_s5] sm:$0xff] (!%p252_p3)  }
   0xb   : > { %1054 = vmatpush3.bf16.msra.mxu0 (!%p252_p3), %v358_v1  ;;  %p307_p7 = scmp.gt.s32.totalorder (!%p252_p3), %s1016_s11, 0  ;;  %s1039_s20 = sshll.u32 (!%p252_p3), %s1147_s24, 6  ;;  %497 = vst.msk [vmem:[#allocation2] sm:$0x1] (!%p252_p3), %vm496_vm2, %v1165_v20  ;;  %498 = vst.msk [vmem:[#allocation2 + $0x18] sm:$0x1] (!%p252_p3), %vm496_vm2, %v1165_v20  ;;  %1067 = vmatprep.subr.bf16.mxu1 (!%p252_p3), %v1123_v21 }
   0xc   : > { %s323_s22 = sadd.s32 (!%p252_p3), 4, %s1243_s10  ;;  %499 = vst.msk [vmem:[#allocation2 + $0x30] sm:$0x1] (!%p252_p3), %vm496_vm2, %v1165_v20  ;;  %500 = vst.msk [vmem:[#allocation2 + $0x48] sm:$0x1] (!%p252_p3), %vm496_vm2, %v1165_v20  ;;  %vm790_vm3 = vcmask (!%p252_p3), 1043456   ;;  %1068 = vmatpush3.bf16.msra.mxu1 (!%p252_p3), %v1123_v21 }
   0xd   : > { %p324_p8 = scmp.lt.s32.totalorder (!%p252_p3), %s323_s22, 15  ;;  %503 = vst.msk [vmem:[#allocation2 + $0x11] sm:$0x1] (!%p252_p3), %vm496_vm2, %v1165_v20  ;;  %504 = vst.msk [vmem:[#allocation2 + $0x29] sm:$0x1] (!%p252_p3), %vm496_vm2, %v1165_v20  ;;  %p472_p9 = scmp.gt.s32.totalorder (!%p252_p3), %s1147_s24, 0 }
   0xe   : > { %505 = vst.msk [vmem:[#allocation2 + $0x41] sm:$0x1] (!%p252_p3), %vm496_vm2, %v1165_v20  ;;  %501 = vst.msk [vmem:[#allocation2 + $0x60] sm:$0x1] (!%p252_p3), %vm496_vm2, %v1165_v20  ;;  %v1124_v22 = vld [vmem:[%s1528_s5 + $0x8] ss:$0 sps:$4 sm:$0xff] (!%p252_p3)  }
   0xf   : > { %502 = vst.msk [vmem:[#allocation2 + $0x78] sm:$0x1] (!%p252_p3), %vm496_vm2, %v1165_v20  ;;  %506 = vst.msk [vmem:[#allocation2 + $0x59] sm:$0x1] (!%p252_p3), %vm496_vm2, %v1165_v20  ;;  %1080 = vmatprep.subr.msk.bf16.mxu1 (!%p252_p3), %vm790_vm3, %v1124_v22  ;;  %v792_v23 = vsel (!%p252_p3), %vm790_vm3, %v1124_v22, 0  ;;  %v1280_v30 = vshrl.u32 (!%p252_p3), %v560_v24, 7 }
  0x10   : > { %s1546_s25 = smov (!%p288_p5, %s1151_s25), 1  ;;  %s1548_s11 = smov (!%p307_p7, %s1016_s11), 0  ;;  %507 = vst.msk [vmem:[#allocation2 + $0x71] sm:$0x1] %vm496_vm2, %v1165_v20  ;;  %508 = vst.msk [vmem:[#allocation2 + $0x89] sm:$0x1] %vm496_vm2, %v1165_v20  ;;  %1070 = vmatpush3.bf16.msra.mxu1 %v792_v23 }
  0x11   : > { %s297_s12 = scalar_select %p296_p6, %s1243_s10, 15  ;;  %v1276_v25 = vld [vmem:[%s1525_s2] ss:$0 sm:$0xff]  ;;  %vm509_vm4 = vcmask 195584   ;;  %v562_v40 = vsub.s32 0, %v1280_v30  ;;  %v574_v41 = vsub.s32 1, %v1280_v30 }
  0x12   : > { %s1038_s13 = sshll.u32 %s1546_s25, 8  ;;  %s1013_s14 = sshll.u32 %s1546_s25, 5  ;;  %v522_v44 = vld [vmem:[%s1526_s3] sm:$0xff]  ;;  %v614_v45 = vsub.s32 3, %v1280_v30  ;;  %v634_v48 = vsub.s32 4, %v1280_v30  ;;  %v594_v53 = vsub.s32 2, %v1280_v30 }
  0x13   : > { %s1251_s17 = scalar_lea.vmem %s1523_s0, %s1038_s13  ;;  %s1012_s18 = sshll.u32 %s297_s12, 1  ;;  %v1308_v51 = vrot.slane %v522_v44, %v562_v40  ;;  %v1310_v52 = vrot.slane %v522_v44, %v574_v41  ;;  %v654_v56 = vsub.s32 5, %v1280_v30  ;;  %v674_v57 = vsub.s32 6, %v1280_v30 }
  0x14   : > { %s1253_s19 = sadd.s32 %s1013_s14, %s1012_s18  ;;  %s314_s21 = scalar_lea.vmem %s1251_s17, %s1039_s20  ;;  %v1322_v61 = vrot.slane %v522_v44, %v614_v45  ;;  %v694_v62 = vsub.s32 7, %v1280_v30  ;;  %vm899_vm7 = vcmask 64512  }
  0x15   : > { %v315_v2 = vld [vmem:[%s314_s21] sm:$0xff]  ;;  %v316_v3 = vld [vmem:[%s314_s21 + $0x8] sm:$0xff]  ;;  %s1017_s23 = sshll.u32 %s1548_s11, 4  ;;  %v317_v4 = vld [vmem:[%s314_s21 + $0x10] sm:$0xff]  ;;  %s1550_s22 = smov (!%p324_p8, %s323_s22), 15 }
  0x16   : > { %v318_v5 = vld [vmem:[%s314_s21 + $0x18] sm:$0xff]  ;;  %s310_s25 = scalar_lea.vmem %s1251_s17, %s1017_s23  ;;  %v331_v8 = vpack.c.bf16 %v316_v3, %v315_v2  ;;  %v319_v11 = vld [vmem:[%s314_s21 + $0x20] sm:$0xff]  ;;  %v320_v12 = vld [vmem:[%s314_s21 + $0x28] sm:$0xff]  ;;  %s1019_s8 = sshll.u32 %s1550_s22, 4  ;;  %v1326_v3 = vrot.slane %v522_v44, %v634_v48  ;;  %v1352_v21 = vrot.slane %v522_v44, %v694_v62 }
  0x17   : > { %v311_v6 = vld [vmem:[%s310_s25] sm:$0xff]  ;;  %v312_v7 = vld [vmem:[%s310_s25 + $0x8] sm:$0xff]  ;;  %v332_v10 = vpack.c.bf16 %v318_v5, %v317_v4  ;;  %v321_v13 = vld [vmem:[%s314_s21 + $0x30] sm:$0xff]  ;;  %v333_v15 = vpack.c.bf16 %v320_v12, %v319_v11  ;;  %s327_s9 = scalar_lea.vmem %s1251_s17, %s1019_s8  ;;  %s1166_s17 = smov 104  }
  0x18   : > { %v330_v9 = vpack.c.bf16 %v312_v7, %v311_v6  ;;  %v322_v14 = vld [vmem:[%s314_s21 + $0x38] sm:$0xff]  ;;  %v328_v17 = vld [vmem:[%s327_s9] sm:$0xff]  ;;  %v329_v18 = vld [vmem:[%s327_s9 + $0x8] sm:$0xff]  ;;  %s473_s14 = scalar_select %p472_p9, 1, 0  ;;  %v1331_v7 = vrot.slane %v522_v44, %v594_v53 }
  0x19   : > { %v334_v16 = vpack.c.bf16 %v322_v14, %v321_v13  ;;  %v335_v19 = vpack.c.bf16 %v329_v18, %v328_v17  ;;  %p476_p10 = scmp.lt.s32.totalorder %s1147_s24, 3  ;;  %v1336_v13 = vrot.slane %v522_v44, %v654_v56  ;;  %v1338_v14 = vrot.slane %v522_v44, %v674_v57  ;;  %s1014_s10 = sshll.u32 %s1253_s19, 3 }
  0x1a   : > { %1055 = vmatprep.mubr.msk.bf16.mxu0 %vm337_vm1, %v330_v9  ;;  %v474_v27 = vstv %s473_s14  ;;  %s1490_s13 = scalar_lea.vmem %s1530_s7, %s1014_s10 }
  0x1b   : > { %1056 = vmatmul.mubr.msk.bf16.vlgmr.msra.gmra.mrb[0].mxu0 %vm337_vm1, %v331_v8  ;;  %vm1283_vm5 = vcmp.eq.s32.totalorder %v474_v27, 1  ;;  %s1317_s21 = scalar_select %p476_p10, 1, 0 }
  0x1c   : > { %1059 = vmatprep.mubr.msk.bf16.mxu0 %vm337_vm1, %v332_v10 }
  0x1d   : > { %v478_v9 = vstv %s1317_s21 }
  0x1e   : > { %vm1364_vm6 = vcmp.eq.s32.totalorder %v478_v9, 1 }
  0x23   : > { %1060 = vmatmul.mubr.msk.bf16.gmra.mrb[4].mxu0 %vm337_vm1, %v333_v15 }
  0x24   : > { %1063 = vmatprep.mubr.msk.bf16.mxu0 %vm337_vm1, %v334_v16 }
  0x2b   : > { %1064 = vmatmul.mubr.msk.bf16.gmra.mrb[8].mxu0 %vm337_vm1, %v335_v19 }
  0xee   : > { %v1057_v26 = vpop.f32.mrb[0].mxu0 }
  0xef   : > { %v450_v28 = vadd.f32 %v1057_v26, %v1276_v25  ;;  %867 = vrot.lane.b32.xlu0 %v1057_v26, %s1166_s17  ;;  %v394_v29 = vpop.f32.mrb[1].mxu0 }
  0xf0   : > { %v448_v31 = vadd.f32 %v1276_v25, %v394_v29  ;;  %v1058_v32 = vpop.f32.mrb[2].mxu0 }
  0xf1   : > { %v462_v33 = vmax.f32 %v450_v28, 0.0  ;;  %v451_v35 = vadd.f32 %v1058_v32, %v1276_v25  ;;  %v397_v36 = vpop.f32.mrb[3].mxu0 }
  0xf2   : > { %v460_v37 = vmax.f32 %v448_v31, 0.0  ;;  %v449_v38 = vadd.f32 %v1276_v25, %v397_v36 }
  0xf3   : > { %512 = vst.msk [vmem:[#allocation2 + $0x19] sm:$0xff] %vm509_vm4, %v462_v33  ;;  %v463_v39 = vmax.f32 %v451_v35, 0.0  ;;  %869 = vrot.lane.b32.xlu0 %v1058_v32, %s1166_s17 }
  0xf4   : > { %v484_v42 = vsel %vm1283_vm5, %v460_v37, 0.0  ;;  %v461_v43 = vmax.f32 %v449_v38, 0.0 }
  0xf5   : > { %510 = vst.msk [vmem:[#allocation2 + $0x1] sm:$0xff] %vm509_vm4, %v484_v42  ;;  %513 = vst.msk [vmem:[#allocation2 + $0x21] sm:$0xff] %vm509_vm4, %v463_v39 }
  0xf6   : > { %v485_v46 = vsel %vm1283_vm5, %v461_v43, 0.0  ;;  %v1061_v47 = vpop.f32.mrb[4].mxu0 }
  0xf7   : > { %511 = vst.msk [vmem:[#allocation2 + $0x9] sm:$0xff] %vm509_vm4, %v485_v46  ;;  %v454_v49 = vadd.f32 %v1061_v47, %v1276_v25  ;;  %875 = vrot.lane.b32.xlu0 %v1061_v47, %s1166_s17  ;;  %v410_v50 = vpop.f32.mrb[5].mxu0 }
  0xf8   : > { %v452_v54 = vadd.f32 %v1276_v25, %v410_v50  ;;  %871 = vrot.lane.b32.xlu1 %v410_v50, %s1166_s17  ;;  %v1062_v55 = vpop.f32.mrb[6].mxu0 }
  0xf9   : > { %v466_v58 = vmax.f32 %v454_v49, 0.0  ;;  %v455_v59 = vadd.f32 %v1062_v55, %v1276_v25  ;;  %v413_v60 = vpop.f32.mrb[7].mxu0 }
  0xfa   : > { %v464_v63 = vmax.f32 %v452_v54, 0.0  ;;  %v453_v0 = vadd.f32 %v1276_v25, %v413_v60  ;;  %v526_v1 = vld [vmem:[#allocation2 + $0x18] sm:$0xff] }
  0xfb   : > { %v538_v2 = vld [vmem:[#allocation2 + $0x19] sm:$0xff]  ;;  %516 = vst.msk [vmem:[#allocation2 + $0x49] sm:$0xff] %vm509_vm4, %v466_v58  ;;  %v467_v4 = vmax.f32 %v455_v59, 0.0  ;;  %v566_v5 = vmul.f32 %v1308_v51, %v526_v1  ;;  %v1350_v20 = vmul.f32 %v1322_v61, %v526_v1 }
  0xfc   : > { %v578_v6 = vmul.f32 %v1310_v52, %v538_v2  ;;  %514 = vst.msk [vmem:[#allocation2 + $0x31] sm:$0xff] %vm509_vm4, %v464_v63  ;;  %v465_v8 = vmax.f32 %v453_v0, 0.0  ;;  %877 = vrot.lane.b32.xlu1 %v1062_v55, %s1166_s17  ;;  %v524_v10 = vld [vmem:[#allocation2] sm:$0xff]  ;;  %v1359_v30 = vmul.f32 %v1326_v3, %v538_v2 }
  0xfd   : > { %v527_v11 = vld [vmem:[#allocation2 + $0x20] sm:$0xff]  ;;  %517 = vst.msk [vmem:[#allocation2 + $0x51] sm:$0xff] %vm509_vm4, %v467_v4  ;;  %v564_v18 = vmul.f32 %v1308_v51, %v524_v10 }
  0xfe   : > { %v536_v12 = vld [vmem:[#allocation2 + $0x1] sm:$0xff]  ;;  %515 = vst.msk [vmem:[#allocation2 + $0x39] sm:$0xff] %vm509_vm4, %v465_v8  ;;  %v1065_v22 = vpop.f32.mrb[8].mxu0  ;;  %v537_v24 = vld [vmem:[#allocation2 + $0x9] sm:$0xff]  ;;  %v567_v27 = vmul.f32 %v1308_v51, %v527_v11  ;;  %v586_v29 = vadd.f32 %v578_v6, %v566_v5  ;;  %v617_v53 = vmul.f32 %v1322_v61, %v527_v11 }
  0xff   : > { %v1341_v15 = vld [vmem:[#allocation2 + $0x21] sm:$0xff]  ;;  %v576_v19 = vmul.f32 %v1310_v52, %v536_v12  ;;  %v458_v31 = vadd.f32 %v1065_v22, %v1276_v25  ;;  %v426_v32 = vpop.f32.mrb[9].mxu0  ;;  %v549_v33 = vld [vmem:[#allocation2 + $0xa] sm:$0xff]  ;;  %v577_v35 = vmul.f32 %v1310_v52, %v537_v24 }
 0x100   : > { %v1343_v16 = vld [vmem:[#allocation2 + $0x1a] sm:$0xff]  ;;  %v1345_v17 = vld [vmem:[#allocation2 + $0x22] sm:$0xff]  ;;  %v579_v28 = vmul.f32 %v1310_v52, %v1341_v15  ;;  %v456_v38 = vadd.f32 %v1276_v25, %v426_v32  ;;  %873 = vrot.lane.b32.xlu1 %v413_v60, %s1166_s17  ;;  %879 = vrot.lane.b32.xlu0 %v426_v32, %s1166_s17  ;;  %v1066_v39 = vpop.f32.mrb[10].mxu0  ;;  %v597_v50 = vmul.f32 %v1331_v7, %v549_v33 }
 0x101   : > { %v525_v23 = vld [vmem:[#allocation2 + $0x8] sm:$0xff]  ;;  %v584_v36 = vadd.f32 %v576_v19, %v564_v18  ;;  %v598_v41 = vmul.f32 %v1331_v7, %v1343_v16  ;;  %v470_v42 = vmax.f32 %v458_v31, 0.0  ;;  %v459_v43 = vadd.f32 %v1066_v39, %v1276_v25  ;;  %v429_v44 = vpop.f32.mrb[11].mxu0 }
 0x102   : > { %v548_v26 = vld [vmem:[#allocation2 + $0x2] sm:$0xff]  ;;  %v565_v34 = vmul.f32 %v1308_v51, %v525_v23  ;;  %v599_v46 = vmul.f32 %v1331_v7, %v1345_v17  ;;  %v468_v47 = vmax.f32 %v456_v38, 0.0  ;;  %v457_v48 = vadd.f32 %v1276_v25, %v429_v44 }
 0x103   : > { %v596_v40 = vmul.f32 %v1331_v7, %v548_v26  ;;  %v1378_v49 = vld [vmem:[#allocation2 + $0x48] sm:$0xff]  ;;  %v494_v54 = vsel %vm1364_vm6, %v470_v42, 0.0  ;;  %v471_v55 = vmax.f32 %v459_v43, 0.0  ;;  %v528_v56 = vld [vmem:[#allocation2 + $0x30] sm:$0xff]  ;;  %v587_v58 = vadd.f32 %v579_v28, %v567_v27 }
 0x104   : > { %v585_v45 = vadd.f32 %v577_v35, %v565_v34  ;;  %v540_v57 = vld [vmem:[#allocation2 + $0x31] sm:$0xff]  ;;  %520 = vst.msk [vmem:[#allocation2 + $0x79] sm:$0xff] %vm509_vm4, %v494_v54  ;;  %518 = vst.msk [vmem:[#allocation2 + $0x61] sm:$0xff] %vm509_vm4, %v468_v47  ;;  %v469_v60 = vmax.f32 %v457_v48, 0.0  ;;  %881 = vrot.lane.b32.xlu1 %v429_v44, %s1166_s17  ;;  %v568_v62 = vmul.f32 %v1308_v51, %v528_v56 }
 0x105   : > { %v604_v59 = vadd.f32 %v596_v40, %v584_v36  ;;  %v1387_v25 = vld [vmem:[#allocation2 + $0x50] sm:$0xff]  ;;  %v580_v63 = vmul.f32 %v1310_v52, %v540_v57  ;;  %v495_v1 = vsel %vm1364_vm6, %v471_v55, 0.0  ;;  %v529_v2 = vld [vmem:[#allocation2 + $0x38] sm:$0xff]  ;;  %v570_v6 = vmul.f32 %v1308_v51, %v1378_v49 }
 0x106   : > { %v605_v0 = vadd.f32 %v597_v50, %v585_v45  ;;  %v541_v4 = vld [vmem:[#allocation2 + $0x39] sm:$0xff]  ;;  %v606_v8 = vadd.f32 %v598_v41, %v586_v29  ;;  %v618_v9 = vmul.f32 %v1322_v61, %v528_v56  ;;  %521 = vst.msk [vmem:[#allocation2 + $0x81] sm:$0xff] %vm509_vm4, %v495_v1  ;;  %519 = vst.msk [vmem:[#allocation2 + $0x69] sm:$0xff] %vm509_vm4, %v469_v60  ;;  %v542_v45 = vld [vmem:[#allocation2 + $0x49] sm:$0xff] }
 0x107   : > { %v552_v5 = vld [vmem:[#allocation2 + $0x32] sm:$0xff]  ;;  %v553_v10 = vld [vmem:[#allocation2 + $0x3a] sm:$0xff]  ;;  %v569_v11 = vmul.f32 %v1308_v51, %v529_v2  ;;  %v581_v12 = vmul.f32 %v1310_v52, %v541_v4  ;;  %v588_v18 = vadd.f32 %v580_v63, %v568_v62  ;;  %v571_v22 = vmul.f32 %v1308_v51, %v1387_v25 }
 0x108   : > { %v600_v19 = vmul.f32 %v1331_v7, %v552_v5  ;;  %v607_v23 = vadd.f32 %v599_v46, %v587_v58  ;;  %v619_v24 = vmul.f32 %v1322_v61, %v529_v2  ;;  %v624_v26 = vadd.f32 %v1350_v20, %v604_v59  ;;  %v554_v58 = vld [vmem:[#allocation2 + $0x4a] sm:$0xff]  ;;  %v555_v59 = vld [vmem:[#allocation2 + $0x52] sm:$0xff] }
 0x109   : > { %v589_v27 = vadd.f32 %v581_v12, %v569_v11  ;;  %v601_v28 = vmul.f32 %v1331_v7, %v553_v10  ;;  %v625_v29 = vadd.f32 %v617_v53, %v605_v0  ;;  %v626_v31 = vadd.f32 %v618_v9, %v606_v8 }
 0x10a   : > { %v608_v32 = vadd.f32 %v600_v19, %v588_v18  ;;  %v627_v33 = vadd.f32 %v619_v24, %v607_v23  ;;  %v637_v34 = vmul.f32 %v1326_v3, %v1341_v15  ;;  %v638_v35 = vmul.f32 %v1326_v3, %v540_v57  ;;  %v1439_v18 = vld [vmem:[%s1527_s4] ss:$0 sm:$0xff] }
 0x10b   : > { %v609_v36 = vadd.f32 %v601_v28, %v589_v27  ;;  %v639_v51 = vmul.f32 %v1326_v3, %v541_v4  ;;  %v644_v37 = vadd.f32 %v1359_v30, %v624_v26  ;;  %v656_v20 = vmul.f32 %v1336_v13, %v1343_v16  ;;  %v1423_v16 = vld [vmem:[%s1526_s3 + $0x8] ss:$0 sm:$0xff] }
 0x10c   : > { %v620_v38 = vmul.f32 %v1322_v61, %v1378_v49  ;;  %v645_v39 = vadd.f32 %v637_v34, %v625_v29  ;;  %v646_v40 = vadd.f32 %v638_v35, %v626_v31  ;;  %v657_v41 = vmul.f32 %v1336_v13, %v1345_v17  ;;  %v543_v17 = vld [vmem:[#allocation2 + $0x51] sm:$0xff] }
 0x10d   : > { %v621_v15 = vmul.f32 %v1322_v61, %v1387_v25  ;;  %v647_v42 = vadd.f32 %v639_v51, %v627_v33  ;;  %v658_v43 = vmul.f32 %v1336_v13, %v552_v5  ;;  %v664_v44 = vadd.f32 %v656_v20, %v644_v37  ;;  %v544_v51 = vld [vmem:[#allocation2 + $0x61] sm:$0xff] }
 0x10e   : > { %v628_v30 = vadd.f32 %v620_v38, %v608_v32  ;;  %v665_v46 = vadd.f32 %v657_v41, %v645_v39  ;;  %v676_v47 = vmul.f32 %v1338_v14, %v528_v56  ;;  %v677_v48 = vmul.f32 %v1338_v14, %v529_v2  ;;  %v532_v32 = vld [vmem:[#allocation2 + $0x60] sm:$0xff]  ;;  %v545_v41 = vld [vmem:[#allocation2 + $0x69] sm:$0xff] }
 0x10f   : > { %v629_v50 = vadd.f32 %v621_v15, %v609_v36  ;;  %v659_v53 = vmul.f32 %v1336_v13, %v553_v10  ;;  %v666_v54 = vadd.f32 %v658_v43, %v646_v40  ;;  %v696_v55 = vmul.f32 %v1352_v21, %v540_v57  ;;  %v533_v36 = vld [vmem:[#allocation2 + $0x68] sm:$0xff] }
 0x110   : > { %v684_v60 = vadd.f32 %v676_v47, %v664_v44  ;;  %v685_v62 = vadd.f32 %v677_v48, %v665_v46  ;;  %v697_v63 = vmul.f32 %v1352_v21, %v541_v4  ;;  %v582_v0 = vmul.f32 %v1310_v52, %v542_v45  ;;  %v556_v15 = vld [vmem:[#allocation2 + $0x62] sm:$0xff] }
 0x111   : > { %v667_v1 = vadd.f32 %v659_v53, %v647_v42  ;;  %v716_v56 = vmul.f32 %v1423_v16, %v552_v5  ;;  %v717_v2 = vmul.f32 %v1423_v16, %v553_v10  ;;  %v583_v8 = vmul.f32 %v1310_v52, %v543_v17 }
 0x112   : > { %v704_v9 = vadd.f32 %v696_v55, %v684_v60  ;;  %v705_v11 = vadd.f32 %v697_v63, %v685_v62  ;;  %v602_v12 = vmul.f32 %v1331_v7, %v554_v58  ;;  %v603_v57 = vmul.f32 %v1331_v7, %v555_v59 }
 0x113   : > { %v590_v4 = vadd.f32 %v582_v0, %v570_v6  ;;  %v591_v19 = vadd.f32 %v583_v8, %v571_v22  ;;  %v640_v23 = vmul.f32 %v1326_v3, %v542_v45  ;;  %v678_v5 = vmul.f32 %v1338_v14, %v1378_v49 }
 0x114   : > { %v724_v10 = vadd.f32 %v716_v56, %v704_v9  ;;  %v725_v52 = vadd.f32 %v717_v2, %v705_v11  ;;  %v641_v24 = vmul.f32 %v1326_v3, %v543_v17  ;;  %v679_v26 = vmul.f32 %v1338_v14, %v1387_v25  ;;  %v534_v2 = vld [vmem:[#allocation2 + $0x78] sm:$0xff] }
 0x115   : > { %v660_v7 = vmul.f32 %v1336_v13, %v554_v58  ;;  %v661_v27 = vmul.f32 %v1336_v13, %v555_v59  ;;  %v686_v28 = vadd.f32 %v678_v5, %v666_v54  ;;  %v698_v6 = vmul.f32 %v1352_v21, %v542_v45  ;;  %v546_v5 = vld [vmem:[#allocation2 + $0x79] sm:$0xff] }
 0x116   : > { %v739_v22 = vadd.f32 %v1439_v18, %v724_v10  ;;  %v740_v29 = vadd.f32 %v1439_v18, %v725_v52  ;;  %v687_v31 = vadd.f32 %v679_v26, %v667_v1  ;;  %v699_v49 = vmul.f32 %v1352_v21, %v543_v17  ;;  %v547_v26 = vld [vmem:[#allocation2 + $0x81] sm:$0xff] }
 0x117   : > { %v610_v33 = vadd.f32 %v602_v12, %v590_v4  ;;  %v611_v34 = vadd.f32 %v603_v57, %v591_v19  ;;  %v706_v35 = vadd.f32 %v698_v6, %v686_v28  ;;  %v718_v25 = vmul.f32 %v1423_v16, %v554_v58  ;;  %v535_v4 = vld [vmem:[#allocation2 + $0x80] sm:$0xff] }
 0x118   : > { %v747_v37 = vmax.f32 %v739_v22, 0.0  ;;  %v748_v20 = vmax.f32 %v740_v29, 0.0  ;;  %v707_v38 = vadd.f32 %v699_v49, %v687_v31  ;;  %v719_v39 = vmul.f32 %v1423_v16, %v555_v59  ;;  %v557_v59 = vld [vmem:[#allocation2 + $0x6a] sm:$0xff]  ;;  %v558_v28 = vld [vmem:[#allocation2 + $0x7a] sm:$0xff] }
 0x119   : > { %v726_v40 = vadd.f32 %v718_v25, %v706_v35  ;;  %v622_v42 = vmul.f32 %v1322_v61, %v532_v32  ;;  %v648_v43 = vadd.f32 %v640_v23, %v628_v30  ;;  %v649_v44 = vadd.f32 %v641_v24, %v629_v50 }
 0x11a   : > { %v755_v45 = vpack.c.bf16 %v748_v20, %v747_v37  ;;  %v727_v46 = vadd.f32 %v719_v39, %v707_v38  ;;  %v623_v47 = vmul.f32 %v1322_v61, %v533_v36  ;;  %v642_v48 = vmul.f32 %v1326_v3, %v544_v51 }
 0x11b   : > { %v741_v17 = vadd.f32 %v1439_v18, %v726_v40  ;;  %v668_v53 = vadd.f32 %v660_v7, %v648_v43  ;;  %v669_v54 = vadd.f32 %v661_v27, %v649_v44  ;;  %v680_v55 = vmul.f32 %v1338_v14, %v532_v32 }
 0x11c   : > { %1071 = vmatprep.mubr.msk.bf16.mxu1 %vm509_vm4, %v755_v45  ;;  %v742_v58 = vadd.f32 %v1439_v18, %v727_v46  ;;  %v643_v30 = vmul.f32 %v1326_v3, %v545_v41  ;;  %v662_v50 = vmul.f32 %v1336_v13, %v556_v15  ;;  %v681_v60 = vmul.f32 %v1338_v14, %v533_v36  ;;  %v1029_v45 = vld [vmem:[%s1529_s6] ss:$0 sm:$0xff] }
 0x11d   : > { %v749_v61 = vmax.f32 %v741_v17, 0.0  ;;  %v688_v62 = vadd.f32 %v680_v55, %v668_v53  ;;  %v700_v63 = vmul.f32 %v1352_v21, %v544_v51  ;;  %v701_v0 = vmul.f32 %v1352_v21, %v545_v41 }
 0x11e   : > { %v750_v1 = vmax.f32 %v742_v58, 0.0  ;;  %v689_v56 = vadd.f32 %v681_v60, %v669_v54  ;;  %v630_v8 = vadd.f32 %v622_v42, %v610_v33  ;;  %v631_v9 = vadd.f32 %v623_v47, %v611_v34 }
 0x11f   : > { %v663_v11 = vmul.f32 %v1336_v13, %v557_v59  ;;  %v708_v12 = vadd.f32 %v700_v63, %v688_v62  ;;  %v720_v3 = vmul.f32 %v1423_v16, %v556_v15  ;;  %v721_v57 = vmul.f32 %v1423_v16, %v557_v59  ;;  %v559_v13 = vld [vmem:[#allocation2 + $0x82] sm:$0xff] }
 0x120   : > { %v756_v19 = vpack.c.bf16 %v750_v1, %v749_v61  ;;  %v709_v23 = vadd.f32 %v701_v0, %v689_v56  ;;  %v650_v10 = vadd.f32 %v642_v48, %v630_v8  ;;  %v651_v52 = vadd.f32 %v643_v30, %v631_v9 }
 0x121   : > { %v728_v24 = vadd.f32 %v720_v3, %v708_v12  ;;  %v682_v7 = vmul.f32 %v1338_v14, %v534_v2  ;;  %v683_v29 = vmul.f32 %v1338_v14, %v535_v4  ;;  %v702_v49 = vmul.f32 %v1352_v21, %v546_v5 }
 0x122   : > { %1072 = vmatmul.mubr.msk.bf16.vlgmr.msra.gmra.mrb[0].mxu1 %vm509_vm4, %v756_v19  ;;  %v729_v27 = vadd.f32 %v721_v57, %v709_v23  ;;  %v670_v6 = vadd.f32 %v662_v50, %v650_v10  ;;  %v671_v22 = vadd.f32 %v663_v11, %v651_v52  ;;  %v703_v35 = vmul.f32 %v1352_v21, %v547_v26 }
 0x123   : > { %v743_v31 = vadd.f32 %v1439_v18, %v728_v24  ;;  %v722_v25 = vmul.f32 %v1423_v16, %v558_v28  ;;  %v723_v36 = vmul.f32 %v1423_v16, %v559_v13 }
 0x124   : > { %v744_v32 = vadd.f32 %v1439_v18, %v729_v27  ;;  %v690_v33 = vadd.f32 %v682_v7, %v670_v6  ;;  %v691_v34 = vadd.f32 %v683_v29, %v671_v22 }
 0x125   : > { %v751_v51 = vmax.f32 %v743_v31, 0.0 }
 0x126   : > { %v752_v37 = vmax.f32 %v744_v32, 0.0  ;;  %v710_v20 = vadd.f32 %v702_v49, %v690_v33  ;;  %v711_v38 = vadd.f32 %v703_v35, %v691_v34 }
 0x128   : > { %v757_v14 = vpack.c.bf16 %v752_v37, %v751_v51  ;;  %v730_v39 = vadd.f32 %v722_v25, %v710_v20  ;;  %v731_v40 = vadd.f32 %v723_v36, %v711_v38 }
 0x12a   : > { %1075 = vmatprep.mubr.msk.bf16.mxu1 %vm509_vm4, %v757_v14  ;;  %v745_v41 = vadd.f32 %v1439_v18, %v730_v39  ;;  %v746_v15 = vadd.f32 %v1439_v18, %v731_v40 }
 0x12c   : > { %v753_v42 = vmax.f32 %v745_v41, 0.0  ;;  %v754_v21 = vmax.f32 %v746_v15, 0.0 }
 0x12e   : > { %v758_v43 = vpack.c.bf16 %v754_v21, %v753_v42 }
 0x130   : > { %1076 = vmatmul.mubr.msk.bf16.gmra.mrb[4].mxu1 %vm509_vm4, %v758_v43 }
 0x161   : > { %v868_v46 = vpop.permute.xlu0 %867 }
 0x165   : > { %v870_v60 = vpop.permute.xlu0 %869 }
 0x169   : > { %v876_v63 = vpop.permute.xlu0 %875 }
 0x16a   : > { %v872_v16 = vpop.permute.xlu1 %871 }
 0x16e   : > { %v878_v44 = vpop.permute.xlu1 %877 }
 0x172   : > { %v874_v59 = vpop.permute.xlu1 %873  ;;  %v880_v2 = vpop.permute.xlu0 %879 }
 0x176   : > { %v882_v57 = vpop.permute.xlu1 %881 }
 0x1f5   : > { %v1073_v47 = vpop.f32.mrb[0].mxu1 }
 0x1f6   : > { %v837_v48 = vadd.f32 %v1073_v47, %v1029_v45  ;;  %v828_v17 = vpop.f32.mrb[1].mxu1 }
 0x1f7   : > { %v829_v18 = vadd.f32 %v1029_v45, %v828_v17  ;;  %v1074_v53 = vpop.f32.mrb[2].mxu1 }
 0x1f8   : > { %v893_v54 = vadd.f32 %v872_v16, %v837_v48  ;;  %v840_v55 = vadd.f32 %v1074_v53, %v1029_v45  ;;  %v831_v58 = vpop.f32.mrb[3].mxu1 }
 0x1f9   : > { %v891_v30 = vadd.f32 %v868_v46, %v829_v18  ;;  %v832_v50 = vadd.f32 %v1029_v45, %v831_v58 }
 0x1fa   : > { %902 = vst.msk [vmem:[%s1490_s13 + $0x10] sm:$0xff] %vm899_vm7, %v893_v54  ;;  %v894_v61 = vadd.f32 %v874_v59, %v840_v55 }
 0x1fb   : > { %900 = vst.msk [vmem:[%s1490_s13] sm:$0xff] %vm899_vm7, %v891_v30  ;;  %v892_v62 = vadd.f32 %v870_v60, %v832_v50 }
 0x1fc   : > { %903 = vst.msk [vmem:[%s1490_s13 + $0x18] sm:$0xff] %vm899_vm7, %v894_v61 }
 0x1fd   : > { %901 = vst.msk [vmem:[%s1490_s13 + $0x8] sm:$0xff] %vm899_vm7, %v892_v62 }
 0x203   : > { %v1077_v0 = vpop.f32.mrb[4].mxu1 }
 0x204   : > { %v853_v1 = vadd.f32 %v1077_v0, %v1029_v45  ;;  %v844_v56 = vpop.f32.mrb[5].mxu1 }
 0x205   : > { %v845_v8 = vadd.f32 %v1029_v45, %v844_v56  ;;  %v1078_v9 = vpop.f32.mrb[6].mxu1 }
 0x206   : > { %v897_v11 = vadd.f32 %v880_v2, %v853_v1  ;;  %v856_v12 = vadd.f32 %v1078_v9, %v1029_v45  ;;  %v847_v3 = vpop.f32.mrb[7].mxu1 }
 0x207   : > { %v895_v4 = vadd.f32 %v876_v63, %v845_v8  ;;  %v848_v19 = vadd.f32 %v1029_v45, %v847_v3 }
 0x208   : > { %906 = vst.msk [vmem:[%s1490_s13 + $0x30] sm:$0xff] %vm899_vm7, %v897_v11  ;;  %v898_v23 = vadd.f32 %v882_v57, %v856_v12 }
 0x209   : > { %904 = vst.msk [vmem:[%s1490_s13 + $0x20] sm:$0xff] %vm899_vm7, %v895_v4  ;;  %v896_v5 = vadd.f32 %v878_v44, %v848_v19 }
 0x20a   : > { %907 = vst.msk [vmem:[%s1490_s13 + $0x38] sm:$0xff] %vm899_vm7, %v898_v23 }
 0x20b   : > { %905 = vst.msk [vmem:[%s1490_s13 + $0x28] sm:$0xff] %vm899_vm7, %v896_v5 }
 0x20c PF: > { %s17_s28 = sadd.s32 1, %s1163_s28   ;;  %s1535_s24 = smov %s1155_s26 }
 0x20d   : > { %p14_p11 = scmp.ge.s32.totalorder %s17_s28, 10   ;;  %s1536_s25 = smov %s1159_s27 }
 0x20e   : > { %s1537_s26 = smov %s1540_s29  ;;  %s1538_s27 = smov %s1544_s30 }
 0x20f   :  { %16 = sbr.rel (!%p14_p11) target bundleno = 3 (0x3), region = 81 }

</bundles_post_ra>
